<compile_context>
chip_gen: v7x
topology: tpu7x:2x2x1
jax: 0.10.0
libtpu: 0.0.40
codegen_flags: <defaults>
</compile_context>

<pallas_src>
import jax
import jax.numpy as jnp
from jax.experimental import pallas as pl
from jax.experimental.pallas import tpu as pltpu

SLICE_START = 4
SLICE_STOP = 8
SLICE_SIZE = SLICE_STOP - SLICE_START

_LANE = 128
_SUBLANE = 8
# Per-input-tile budget; with default double-buffering 2*(in + out) tiles stay
# well under v7x's 32 MiB scoped-VMEM default (and trivially under v5e/v6e).
_IN_TILE_BUDGET_BYTES = 8 * 1024 * 1024


def _slice_kernel(x_ref, o_ref):
    # x_ref: (TM, W_block) rows of the flattened input; o_ref: (TM, SLICE_SIZE).
    # Static lane slice -> straight VMEM copy.
    o_ref[...] = x_ref[:, SLICE_START:SLICE_STOP]


def _choose_row_tile(rows: int, w_block: int, itemsize: int) -> int:
    """Row-tile size: sublane-pack multiple, VMEM-budgeted, and (when the row
    count allows) leaving >= 2 grid steps for v7x's two TensorCores."""
    sub = max(_SUBLANE, 32 // itemsize)  # 8 for f32, 16 for bf16, 32 for int8
    if rows <= sub:
        return rows  # full-dim block (always legal, even if < 8 sublanes)
    max_tm = max(sub, (_IN_TILE_BUDGET_BYTES // max(1, w_block * itemsize)) // sub * sub)
    tm = min(rows, max_tm)
    if tm >= rows and rows >= 2 * sub:
        tm = pl.cdiv(rows, 2)  # split so a 2-TC chip gets >= 2 parallel steps
    return max(sub, (tm // sub) * sub)


def slice_w(x: jax.Array) -> jax.Array:
    """Equivalent of torch `input[:, :, :, 4:8]` for an NCHW rank-4 tensor."""
    n, c, h, w = x.shape
    assert w >= SLICE_STOP, "last dim must be >= 8 for the [4:8] slice"

    rows = n * c * h
    x2 = x.reshape(rows, w)  # free for a contiguous row-major NCHW tensor

    # Only DMA the first 128-lane block of W (it contains columns 4:8).
    w_block = w if w < _LANE else _LANE
    itemsize = jnp.dtype(x.dtype).itemsize
    tm = _choose_row_tile(rows, w_block, itemsize)
    grid = (pl.cdiv(rows, tm),)

    out2 = pl.pallas_call(
        _slice_kernel,
        out_shape=jax.ShapeDtypeStruct((rows, SLICE_SIZE), x.dtype),
        grid_spec=pltpu.PrefetchScalarGridSpec(
            num_scalar_prefetch=0,
            grid=grid,
            in_specs=[pl.BlockSpec((tm, w_block), lambda i: (i, 0))],
            out_specs=pl.BlockSpec((tm, SLICE_SIZE), lambda i: (i, 0)),
        ),
        compiler_params=pltpu.CompilerParams(
            dimension_semantics=("parallel",),
        ),
    )(x2)

    return out2.reshape(n, c, h, SLICE_SIZE)


if __name__ == "__main__":
    key = jax.random.PRNGKey(0)
    x = jax.random.normal(key, (2, 4, 16, 16), dtype=jnp.float32)

    out = jax.block_until_ready(slice_w(x))

    # Reference check against plain JAX slicing (same semantics as torch).
    ref = x[:, :, :, 4:8]
    assert out.shape == (2, 4, 16, 4), out.shape
    assert out.dtype == jnp.float32
    assert jnp.array_equal(out, ref), "mismatch vs reference slice"

    print("KERNEL_OK")
</pallas_src>

<mosaic_0001>
module attributes {stable_mosaic.version = 11 : i64} {
  func.func @_slice_kernel(%arg0: i32, %arg1: memref<64x16xf32, #tpu.memory_space<vmem>>, %arg2: memref<64x4xf32, #tpu.memory_space<vmem>>) attributes {dimension_semantics = [#tpu.dimension_semantics<parallel>], iteration_bounds = array<i64: 2>, scalar_prefetch = 0 : i64, scratch_operands = 0 : i64, tpu.core_type = #tpu.core_type<tc>, window_params = [{transform_indices = @transform_0, window_bounds = array<i64: 64, 16>}, {transform_indices = @transform_1, window_bounds = array<i64: 64, 4>}]} {
    %c0 = arith.constant 0 : index
    %c4 = arith.constant 4 : index
    %0 = vector.load %arg1[%c0, %c4] : memref<64x16xf32, #tpu.memory_space<vmem>>, vector<64x4xf32>
    %c0_0 = arith.constant 0 : index
    %c0_1 = arith.constant 0 : index
    %1 = vector.load %arg2[%c0_0, %c0_1] : memref<64x4xf32, #tpu.memory_space<vmem>>, vector<64x4xf32>
    tpu.vector_store %arg2[%c0_0, %c0_1], %0 {strides = array<i32>} : memref<64x4xf32, #tpu.memory_space<vmem>>, vector<64x4xf32>,
    return
  }
  func.func @transform_0(%arg0: i32) -> (i32, i32) {
    %c0_i32 = arith.constant 0 : i32
    %c0_i32_0 = arith.constant 0 : i32
    return %arg0, %c0_i32 : i32, i32
  }
  func.func @transform_1(%arg0: i32) -> (i32, i32) {
    %c0_i32 = arith.constant 0 : i32
    %c0_i32_0 = arith.constant 0 : i32
    return %arg0, %c0_i32 : i32, i32
  }
}

</mosaic_0001>

<bundles_post_ra>
// kernel: tpu_custom_call.1
= control target key start
LH: loop header
LB: loop body
LE: loop exit
PB: predicated region body
PF: predicated region fallthrough
CT: control target
= control target key end

     0   :  { %s264_s6 = smov 0   ;;  %s289_s0 = inlined_call_operand.vmem [shape: f32[128,16], index: 0, kind: input, shape index: {}]   ;;  %s290_s1 = inlined_call_operand.vmem [shape: f32[128,4], index: 1, kind: output, shape index: {}]  }
   0x1 LB: > { %s225_s7 = sadd.s32 4294967295, %s251_s6   ;;  %p229_p0 = scmp.ge.s32.totalorder %s251_s6, 1  ;;  %s251_s6 = sphi %s264_s6, %s11_s6  }
   0x2   : > { %p88_p1 = scmp.lt.s32.totalorder %s251_s6, 3 }
   0x4   : > { %p89_p2 = pnand %p229_p0, %p88_p1 }
   0x5   : > { %s230_s8 = sshll.u32 (!%p89_p2), %s225_s7, 3  ;;  %s253_s13 = smov (!%p89_p2), 124   ;;  %vm160_vm0 = vcmask (!%p89_p2), 31744  }
   0x6   : > { %92 = sbr.rel (%p89_p2) target bundleno = 145 (0x91), region = 24  ;;  %p109_p3 = scmp.lt.s32.totalorder (!%p89_p2), %s230_s8, 15 }
   0xd   : > { %s292_s8 = smov (!%p109_p3, %s230_s8), 15 }
   0xe   : > { %s231_s9 = sshll.u32 %s292_s8, 3 }
   0xf   : > { %s112_s12 = scalar_lea.vmem %s289_s0, %s231_s9  ;;  %s118_s16 = scalar_lea.vmem %s290_s1, %s231_s9 }
  0x10   : > { %v122_v0 = vld [vmem:[%s112_s12 + $0x10] sm:$0xff]  ;;  %v120_v1 = vld [vmem:[%s112_s12] sm:$0xff]  ;;  %v123_v2 = vld [vmem:[%s112_s12 + $0x18] sm:$0xff] }
  0x11   : > { %140 = vrot.lane.b32.xlu1 %v122_v0, %s253_s13  ;;  %136 = vrot.lane.b32.xlu0 %v120_v1, %s253_s13  ;;  %v121_v3 = vld [vmem:[%s112_s12 + $0x8] sm:$0xff]  ;;  %v124_v5 = vld [vmem:[%s112_s12 + $0x20] sm:$0xff] }
  0x12   : > { %v125_v4 = vld [vmem:[%s112_s12 + $0x28] sm:$0xff]  ;;  %v127_v6 = vld [vmem:[%s112_s12 + $0x38] sm:$0xff]  ;;  %v126_v7 = vld [vmem:[%s112_s12 + $0x30] sm:$0xff] }
  0x15   : > { %142 = vrot.lane.b32.xlu1 %v123_v2, %s253_s13  ;;  %138 = vrot.lane.b32.xlu0 %v121_v3, %s253_s13 }
  0x19   : > { %146 = vrot.lane.b32.xlu1 %v125_v4, %s253_s13  ;;  %144 = vrot.lane.b32.xlu0 %v124_v5, %s253_s13 }
  0x1d   : > { %150 = vrot.lane.b32.xlu1 %v127_v6, %s253_s13  ;;  %148 = vrot.lane.b32.xlu0 %v126_v7, %s253_s13 }
  0x83   : > { %v141_v8 = vpop.permute.xlu1 %140  ;;  %v137_v9 = vpop.permute.xlu0 %136 }
  0x84   : > { %163 = vst.msk [vmem:[%s118_s16 + $0x10] sm:$0xff] %vm160_vm0, %v141_v8  ;;  %161 = vst.msk [vmem:[%s118_s16] sm:$0xff] %vm160_vm0, %v137_v9 }
  0x87   : > { %v143_v10 = vpop.permute.xlu1 %142  ;;  %v139_v11 = vpop.permute.xlu0 %138 }
  0x88   : > { %164 = vst.msk [vmem:[%s118_s16 + $0x18] sm:$0xff] %vm160_vm0, %v143_v10  ;;  %162 = vst.msk [vmem:[%s118_s16 + $0x8] sm:$0xff] %vm160_vm0, %v139_v11 }
  0x8b   : > { %v147_v12 = vpop.permute.xlu1 %146  ;;  %v145_v13 = vpop.permute.xlu0 %144 }
  0x8c   : > { %166 = vst.msk [vmem:[%s118_s16 + $0x28] sm:$0xff] %vm160_vm0, %v147_v12  ;;  %165 = vst.msk [vmem:[%s118_s16 + $0x20] sm:$0xff] %vm160_vm0, %v145_v13 }
  0x8f   : > { %v151_v14 = vpop.permute.xlu1 %150  ;;  %v149_v15 = vpop.permute.xlu0 %148 }
  0x90   : > { %168 = vst.msk [vmem:[%s118_s16 + $0x38] sm:$0xff] %vm160_vm0, %v151_v14  ;;  %167 = vst.msk [vmem:[%s118_s16 + $0x30] sm:$0xff] %vm160_vm0, %v149_v15 }
  0x91 PF: > { %s11_s6 = sadd.s32 1, %s251_s6  }
  0x92   : > { %p8_p4 = scmp.ge.s32.totalorder %s11_s6, 4  }
  0x94   :  { %10 = sbr.rel (!%p8_p4) target bundleno = 1 (0x1), region = 54 }

</bundles_post_ra>
